<compile_context>
chip_gen: v5e
topology: v5e:2x2
jax: 0.10.0
libtpu: 0.0.40
codegen_flags: <defaults>
</compile_context>

<pallas_src>
import functools

import jax
import jax.numpy as jnp
from jax.experimental import pallas as pl
from jax.experimental.pallas import tpu as pltpu

HIDDEN = 16          # logical hidden width of the GCN
HP = 128             # lane-padded hidden width used inside the kernels
VMEM_LIMIT = 32 * 1024 * 1024   # explicit scoped-VMEM budget (safe on v5e/v6e/v7x)


# ----------------------------------------------------------------------------
# Pallas kernels
# ----------------------------------------------------------------------------
def gcn_layer_kernel(a_ref, h_ref, w_ref, b_ref, out_ref, acc_ref, *, apply_relu):
    """One GCNConv layer, K-tiled: out = relu((sum_k A[i,k] @ H[k]) @ W + b)."""
    k = pl.program_id(1)

    @pl.when(k == 0)
    def _():
        acc_ref[...] = jnp.zeros_like(acc_ref)

    # [tm, tk] @ [tk, HP] -> f32 accumulate on the MXU
    acc_ref[...] += jnp.dot(a_ref[...], h_ref[...],
                            preferred_element_type=jnp.float32)

    @pl.when(k == pl.num_programs(1) - 1)
    def _():
        # [tm, HP] @ [HP, HP] -> f32 accumulate, then f32 epilogue
        z = jnp.dot(acc_ref[...].astype(jnp.bfloat16), w_ref[...],
                    preferred_element_type=jnp.float32)
        z = z + b_ref[...]
        if apply_relu:
            z = jnp.maximum(z, 0.0)
        out_ref[...] = z.astype(out_ref.dtype)


def gcn_final_kernel(a_ref, h_ref, w_ref, b_ref, wr_ref, br_ref, out_ref, acc_ref):
    """conv3 (no ReLU) fused with the Linear(16->1) head (padded to 128 lanes)."""
    k = pl.program_id(1)

    @pl.when(k == 0)
    def _():
        acc_ref[...] = jnp.zeros_like(acc_ref)

    acc_ref[...] += jnp.dot(a_ref[...], h_ref[...],
                            preferred_element_type=jnp.float32)

    @pl.when(k == pl.num_programs(1) - 1)
    def _():
        z = jnp.dot(acc_ref[...].astype(jnp.bfloat16), w_ref[...],
                    preferred_element_type=jnp.float32)
        z = z + b_ref[...]
        out = jnp.dot(z.astype(jnp.bfloat16), wr_ref[...],
                      preferred_element_type=jnp.float32)
        out_ref[...] = (out + br_ref[...]).astype(out_ref.dtype)


# ----------------------------------------------------------------------------
# pallas_call wrapper for one (rows x K)-tiled layer
# ----------------------------------------------------------------------------
def _layer_call(kernel_fn, a_bf16, h_bf16, small_args, out_dtype, tm, tk):
    np_ = a_bf16.shape[0]
    hp = h_bf16.shape[1]
    grid = (np_ // tm, np_ // tk)

    in_specs = [
        pl.BlockSpec((tm, tk), lambda i, k: (i, k)),   # A tile, streamed from HBM
        pl.BlockSpec((tk, hp), lambda i, k: (k, 0)),   # H K-slab
    ]
    for arr in small_args:                             # weights / biases (tiny)
        in_specs.append(pl.BlockSpec(arr.shape, lambda i, k: (0, 0)))

    out_bytes = jnp.dtype(out_dtype).itemsize
    n_mm = len(small_args) // 2                        # 1 hidden / 2 final (fused head)
    flops = 2 * np_ * np_ * hp + n_mm * 2 * np_ * hp * hp
    bytes_accessed = (np_ * np_ * 2                    # A_hat stream (bf16)
                      + (np_ // tm) * np_ * hp * 2     # H re-streamed per row tile
                      + np_ * hp * out_bytes           # output slab
                      + sum(int(a.size) * a.dtype.itemsize for a in small_args))

    return pl.pallas_call(
        kernel_fn,
        out_shape=jax.ShapeDtypeStruct((np_, hp), out_dtype),
        grid=grid,
        in_specs=in_specs,
        out_specs=pl.BlockSpec((tm, hp), lambda i, k: (i, 0)),
        scratch_shapes=[pltpu.VMEM((tm, hp), jnp.float32)],
        compiler_params=pltpu.CompilerParams(
            dimension_semantics=("parallel", "arbitrary"),
            vmem_limit_bytes=VMEM_LIMIT),
        cost_estimate=pl.CostEstimate(
            flops=flops, transcendentals=0, bytes_accessed=bytes_accessed),
    )(a_bf16, h_bf16, *small_args)


# ----------------------------------------------------------------------------
# Plain-JAX glue
# ----------------------------------------------------------------------------
def _round_up(x, m):
    return ((x + m - 1) // m) * m


def _pick_tile(np_, candidates, min_steps):
    for cand in candidates:
        if np_ % cand == 0 and np_ // cand >= min_steps:
            return cand
    return 128                                   # np_ is always a multiple of 128


def _choose_tiles(np_):
    # Row tile: largest of (1024,512,256,128) dividing np_ while keeping >= 2
    # row-grid steps (so the "parallel" axis can feed both v7x TensorCores).
    tm = _pick_tile(np_, (1024, 512, 256, 128), min_steps=2) if np_ >= 256 else 128
    # K tile: largest divisor; VMEM stays ~6 MiB even at tm = tk = 1024.
    tk = _pick_tile(np_, (1024, 512, 256, 128), min_steps=1)
    return tm, tk


def build_normalized_adjacency(edge_index, n, np_):
    """Dense, padded A_hat matching PyG GCNConv / gcn_norm.

    Messages flow src -> dst, duplicate (non-self-loop) edges accumulate,
    exactly one self-loop per real node (add_remaining_self_loops semantics),
    A_hat = D^{-1/2} (A + I) D^{-1/2} with target-side degree.  Built directly
    at the padded size and cast to bf16 in one pass.
    """
    src, dst = edge_index[0], edge_index[1]
    not_self = (src != dst).astype(jnp.float32)
    adj = jnp.zeros((np_, np_), jnp.float32)
    adj = adj.at[dst, src].add(not_self)                 # scatter-add, dupes accumulate
    diag = jnp.arange(n)
    adj = adj.at[diag, diag].add(1.0)                    # one self-loop per real node
    deg = jnp.sum(adj, axis=1)                           # target-side degree of A + I
    d_inv_sqrt = jnp.where(deg > 0, jax.lax.rsqrt(deg), 0.0)
    a_hat = (d_inv_sqrt[:, None] * adj) * d_inv_sqrt[None, :]
    return a_hat.astype(jnp.bfloat16)


def _pad_to(x, shape):
    pads = [(0, s - d) for d, s in zip(x.shape, shape)]
    return jnp.pad(x, pads)


def _pad_params(params):
    def padw(w):   # weights -> [HP, HP] bf16
        return _pad_to(w.astype(jnp.float32), (HP, HP)).astype(jnp.bfloat16)

    def padb(b):   # biases -> [1, HP] f32
        return _pad_to(b.astype(jnp.float32), (1, HP))

    return {
        "w1": padw(params["w1"]), "b1": padb(params["b1"]),
        "w2": padw(params["w2"]), "b2": padb(params["b2"]),
        "w3": padw(params["w3"]), "b3": padb(params["b3"]),
        "wr": padw(params["wr"]), "br": padb(params["br"]),
    }


@jax.jit
def gcn_forward(data_x, data_edge_index, params):
    n, f_in = data_x.shape
    np_ = _round_up(n, 128)
    tm, tk = _choose_tiles(np_)

    a_p = build_normalized_adjacency(data_edge_index, n, np_)
    x_p = (jnp.zeros((np_, HP), jnp.float32)
           .at[:n, :f_in].set(data_x)
           .astype(jnp.bfloat16))
    pp = _pad_params(params)

    relu_layer = functools.partial(gcn_layer_kernel, apply_relu=True)

    h1 = _layer_call(relu_layer, a_p, x_p, (pp["w1"], pp["b1"]), jnp.bfloat16, tm, tk)
    h2 = _layer_call(relu_layer, a_p, h1, (pp["w2"], pp["b2"]), jnp.bfloat16, tm, tk)
    out_pad = _layer_call(gcn_final_kernel, a_p, h2,
                          (pp["w3"], pp["b3"], pp["wr"], pp["br"]),
                          jnp.float32, tm, tk)
    return out_pad[:n, :1]


def init_params(key, input_features, hidden=HIDDEN):
    ks = jax.random.split(key, 4)

    def glorot(k, shape):
        limit = jnp.sqrt(6.0 / (shape[0] + shape[1]))
        return jax.random.uniform(k, shape, jnp.float32, -limit, limit)

    return {
        "w1": glorot(ks[0], (input_features, hidden)),
        "b1": jnp.zeros((1, hidden), jnp.float32),
        "w2": glorot(ks[1], (hidden, hidden)),
        "b2": jnp.zeros((1, hidden), jnp.float32),
        "w3": glorot(ks[2], (hidden, hidden)),
        "b3": jnp.zeros((1, hidden), jnp.float32),
        "wr": glorot(ks[3], (hidden, 1)),
        "br": jnp.zeros((1, 1), jnp.float32),
    }


if __name__ == "__main__":
    key = jax.random.PRNGKey(0)
    k_x, k_e, k_p = jax.random.split(key, 3)

    num_nodes = 16
    input_features = 8
    num_edges = 32

    data_x = jax.random.normal(k_x, (num_nodes, input_features), jnp.float32)
    data_edge_index = jax.random.randint(k_e, (2, num_edges), 0, num_nodes, jnp.int32)

    params = init_params(k_p, input_features)

    out = gcn_forward(data_x, data_edge_index, params)
    jax.block_until_ready(out)
    assert out.shape == (num_nodes, 1)
    print("KERNEL_OK")
</pallas_src>

<mosaic_0001>
module attributes {stable_mosaic.version = 11 : i64} {
  func.func @gcn_layer_kernel(%arg0: i32, %arg1: i32, %arg2: memref<128x128xbf16, #tpu.memory_space<vmem>>, %arg3: memref<128x128xbf16, #tpu.memory_space<vmem>>, %arg4: memref<128x128xbf16, #tpu.memory_space<vmem>>, %arg5: memref<1x128xf32, #tpu.memory_space<vmem>>, %arg6: memref<128x128xbf16, #tpu.memory_space<vmem>>, %arg7: memref<128x128xf32, #tpu.memory_space<vmem>>) attributes {dimension_semantics = [#tpu.dimension_semantics<parallel>, #tpu.dimension_semantics<arbitrary>], iteration_bounds = array<i64: 1, 1>, scalar_prefetch = 0 : i64, scratch_operands = 1 : i64, tpu.core_type = #tpu.core_type<tc>, window_params = [{transform_indices = @transform_0, window_bounds = array<i64: 128, 128>}, {transform_indices = @transform_1, window_bounds = array<i64: 128, 128>}, {pipeline_mode = #tpu.pipeline_mode<synchronous>, transform_indices = @transform_2, window_bounds = array<i64: 128, 128>}, {pipeline_mode = #tpu.pipeline_mode<synchronous>, transform_indices = @transform_3, window_bounds = array<i64: 1, 128>}, {transform_indices = @transform_4, window_bounds = array<i64: 128, 128>}]} {
    %c0_i32 = arith.constant 0 : i32
    %0 = arith.cmpi eq, %arg1, %c0_i32 : i32
    %1 = arith.extui %0 : i1 to i32
    %c0_i32_0 = arith.constant 0 : i32
    %2 = arith.cmpi ne, %1, %c0_i32_0 : i32
    scf.if %2 {
      %cst_10 = arith.constant 0.000000e+00 : f32
      %12 = vector.broadcast %cst_10 : f32 to vector<128x128xf32>
      %c0_11 = arith.constant 0 : index
      %c0_12 = arith.constant 0 : index
      %13 = vector.load %arg7[%c0_11, %c0_12] : memref<128x128xf32, #tpu.memory_space<vmem>>, vector<128x128xf32>
      tpu.vector_store %arg7[%c0_11, %c0_12], %12 {strides = array<i32>} : memref<128x128xf32, #tpu.memory_space<vmem>>, vector<128x128xf32>,
    } else {
    }
    %c0 = arith.constant 0 : index
    %c0_1 = arith.constant 0 : index
    %3 = vector.load %arg7[%c0, %c0_1] : memref<128x128xf32, #tpu.memory_space<vmem>>, vector<128x128xf32>
    %c0_2 = arith.constant 0 : index
    %c0_3 = arith.constant 0 : index
    %4 = vector.load %arg2[%c0_2, %c0_3] : memref<128x128xbf16, #tpu.memory_space<vmem>>, vector<128x128xbf16>
    %c0_4 = arith.constant 0 : index
    %c0_5 = arith.constant 0 : index
    %5 = vector.load %arg3[%c0_4, %c0_5] : memref<128x128xbf16, #tpu.memory_space<vmem>>, vector<128x128xbf16>
    %cst = arith.constant dense<0.000000e+00> : vector<128x128xf32>
    %6 = tpu.matmul %4, %5, %cst {dimension_numbers = #tpu.dot_dimension_numbers<[1], [0], [0], [1], [0, 0, 1, 1], [], []>} : vector<128x128xbf16>, vector<128x128xbf16>, vector<128x128xf32> -> vector<128x128xf32>
    %7 = arith.addf %3, %6 : vector<128x128xf32>
    %c0_6 = arith.constant 0 : index
    %c0_7 = arith.constant 0 : index
    %8 = vector.load %arg7[%c0_6, %c0_7] : memref<128x128xf32, #tpu.memory_space<vmem>>, vector<128x128xf32>
    tpu.vector_store %arg7[%c0_6, %c0_7], %7 {strides = array<i32>} : memref<128x128xf32, #tpu.memory_space<vmem>>, vector<128x128xf32>,
    %c0_i32_8 = arith.constant 0 : i32
    %9 = arith.cmpi eq, %arg1, %c0_i32_8 : i32
    %10 = arith.extui %9 : i1 to i32
    %c0_i32_9 = arith.constant 0 : i32
    %11 = arith.cmpi ne, %10, %c0_i32_9 : i32
    scf.if %11 {
      %c0_10 = arith.constant 0 : index
      %c0_11 = arith.constant 0 : index
      %12 = vector.load %arg7[%c0_10, %c0_11] : memref<128x128xf32, #tpu.memory_space<vmem>>, vector<128x128xf32>
      %13 = arith.truncf %12 : vector<128x128xf32> to vector<128x128xbf16>
      %c0_12 = arith.constant 0 : index
      %c0_13 = arith.constant 0 : index
      %14 = vector.load %arg4[%c0_12, %c0_13] : memref<128x128xbf16, #tpu.memory_space<vmem>>, vector<128x128xbf16>
      %cst_14 = arith.constant dense<0.000000e+00> : vector<128x128xf32>
      %15 = tpu.matmul %13, %14, %cst_14 {dimension_numbers = #tpu.dot_dimension_numbers<[1], [0], [0], [1], [0, 0, 1, 1], [], []>} : vector<128x128xbf16>, vector<128x128xbf16>, vector<128x128xf32> -> vector<128x128xf32>
      %c0_15 = arith.constant 0 : index
      %c0_16 = arith.constant 0 : index
      %16 = vector.load %arg5[%c0_15, %c0_16] : memref<1x128xf32, #tpu.memory_space<vmem>>, vector<1x128xf32>
      %17 = vector.broadcast %16 : vector<1x128xf32> to vector<128x128xf32>
      %18 = arith.addf %15, %17 : vector<128x128xf32>
      %cst_17 = arith.constant 0.000000e+00 : f32
      %19 = vector.broadcast %cst_17 : f32 to vector<128x128xf32>
      %20 = arith.maximumf %18, %19 : vector<128x128xf32>
      %21 = arith.truncf %20 : vector<128x128xf32> to vector<128x128xbf16>
      %c0_18 = arith.constant 0 : index
      %c0_19 = arith.constant 0 : index
      %22 = vector.load %arg6[%c0_18, %c0_19] : memref<128x128xbf16, #tpu.memory_space<vmem>>, vector<128x128xbf16>
      tpu.vector_store %arg6[%c0_18, %c0_19], %21 {strides = array<i32>} : memref<128x128xbf16, #tpu.memory_space<vmem>>, vector<128x128xbf16>,
    } else {
    }
    return
  }
  func.func @transform_0(%arg0: i32, %arg1: i32) -> (i32, i32) {
    %c0_i32 = arith.constant 0 : i32
    return %arg0, %arg1 : i32, i32
  }
  func.func @transform_1(%arg0: i32, %arg1: i32) -> (i32, i32) {
    %c0_i32 = arith.constant 0 : i32
    %c0_i32_0 = arith.constant 0 : i32
    return %arg1, %c0_i32 : i32, i32
  }
  func.func @transform_2(%arg0: i32, %arg1: i32) -> (i32, i32) {
    %c0_i32 = arith.constant 0 : i32
    %c0_i32_0 = arith.constant 0 : i32
    %c0_i32_1 = arith.constant 0 : i32
    return %c0_i32, %c0_i32_0 : i32, i32
  }
  func.func @transform_3(%arg0: i32, %arg1: i32) -> (i32, i32) {
    %c0_i32 = arith.constant 0 : i32
    %c0_i32_0 = arith.constant 0 : i32
    %c0_i32_1 = arith.constant 0 : i32
    return %c0_i32, %c0_i32_0 : i32, i32
  }
  func.func @transform_4(%arg0: i32, %arg1: i32) -> (i32, i32) {
    %c0_i32 = arith.constant 0 : i32
    %c0_i32_0 = arith.constant 0 : i32
    return %arg0, %c0_i32 : i32, i32
  }
}

module attributes {stable_mosaic.version = 11 : i64} {
  func.func @gcn_final_kernel(%arg0: i32, %arg1: i32, %arg2: memref<128x128xbf16, #tpu.memory_space<vmem>>, %arg3: memref<128x128xbf16, #tpu.memory_space<vmem>>, %arg4: memref<128x128xbf16, #tpu.memory_space<vmem>>, %arg5: memref<1x128xf32, #tpu.memory_space<vmem>>, %arg6: memref<128x128xbf16, #tpu.memory_space<vmem>>, %arg7: memref<1x128xf32, #tpu.memory_space<vmem>>, %arg8: memref<128x128xf32, #tpu.memory_space<vmem>>, %arg9: memref<128x128xf32, #tpu.memory_space<vmem>>) attributes {dimension_semantics = [#tpu.dimension_semantics<parallel>, #tpu.dimension_semantics<arbitrary>], iteration_bounds = array<i64: 1, 1>, scalar_prefetch = 0 : i64, scratch_operands = 1 : i64, tpu.core_type = #tpu.core_type<tc>, window_params = [{transform_indices = @transform_0, window_bounds = array<i64: 128, 128>}, {transform_indices = @transform_1, window_bounds = array<i64: 128, 128>}, {pipeline_mode = #tpu.pipeline_mode<synchronous>, transform_indices = @transform_2, window_bounds = array<i64: 128, 128>}, {pipeline_mode = #tpu.pipeline_mode<synchronous>, transform_indices = @transform_3, window_bounds = array<i64: 1, 128>}, {pipeline_mode = #tpu.pipeline_mode<synchronous>, transform_indices = @transform_4, window_bounds = array<i64: 128, 128>}, {pipeline_mode = #tpu.pipeline_mode<synchronous>, transform_indices = @transform_5, window_bounds = array<i64: 1, 128>}, {transform_indices = @transform_6, window_bounds = array<i64: 128, 128>}]} {
    %c0_i32 = arith.constant 0 : i32
    %0 = arith.cmpi eq, %arg1, %c0_i32 : i32
    %1 = arith.extui %0 : i1 to i32
    %c0_i32_0 = arith.constant 0 : i32
    %2 = arith.cmpi ne, %1, %c0_i32_0 : i32
    scf.if %2 {
      %cst_10 = arith.constant 0.000000e+00 : f32
      %12 = vector.broadcast %cst_10 : f32 to vector<128x128xf32>
      %c0_11 = arith.constant 0 : index
      %c0_12 = arith.constant 0 : index
      %13 = vector.load %arg9[%c0_11, %c0_12] : memref<128x128xf32, #tpu.memory_space<vmem>>, vector<128x128xf32>
      tpu.vector_store %arg9[%c0_11, %c0_12], %12 {strides = array<i32>} : memref<128x128xf32, #tpu.memory_space<vmem>>, vector<128x128xf32>,
    } else {
    }
    %c0 = arith.constant 0 : index
    %c0_1 = arith.constant 0 : index
    %3 = vector.load %arg9[%c0, %c0_1] : memref<128x128xf32, #tpu.memory_space<vmem>>, vector<128x128xf32>
    %c0_2 = arith.constant 0 : index
    %c0_3 = arith.constant 0 : index
    %4 = vector.load %arg2[%c0_2, %c0_3] : memref<128x128xbf16, #tpu.memory_space<vmem>>, vector<128x128xbf16>
    %c0_4 = arith.constant 0 : index
    %c0_5 = arith.constant 0 : index
    %5 = vector.load %arg3[%c0_4, %c0_5] : memref<128x128xbf16, #tpu.memory_space<vmem>>, vector<128x128xbf16>
    %cst = arith.constant dense<0.000000e+00> : vector<128x128xf32>
    %6 = tpu.matmul %4, %5, %cst {dimension_numbers = #tpu.dot_dimension_numbers<[1], [0], [0], [1], [0, 0, 1, 1], [], []>} : vector<128x128xbf16>, vector<128x128xbf16>, vector<128x128xf32> -> vector<128x128xf32>
    %7 = arith.addf %3, %6 : vector<128x128xf32>
    %c0_6 = arith.constant 0 : index
    %c0_7 = arith.constant 0 : index
    %8 = vector.load %arg9[%c0_6, %c0_7] : memref<128x128xf32, #tpu.memory_space<vmem>>, vector<128x128xf32>
    tpu.vector_store %arg9[%c0_6, %c0_7], %7 {strides = array<i32>} : memref<128x128xf32, #tpu.memory_space<vmem>>, vector<128x128xf32>,
    %c0_i32_8 = arith.constant 0 : i32
    %9 = arith.cmpi eq, %arg1, %c0_i32_8 : i32
    %10 = arith.extui %9 : i1 to i32
    %c0_i32_9 = arith.constant 0 : i32
    %11 = arith.cmpi ne, %10, %c0_i32_9 : i32
    scf.if %11 {
      %c0_10 = arith.constant 0 : index
      %c0_11 = arith.constant 0 : index
      %12 = vector.load %arg9[%c0_10, %c0_11] : memref<128x128xf32, #tpu.memory_space<vmem>>, vector<128x128xf32>
      %13 = arith.truncf %12 : vector<128x128xf32> to vector<128x128xbf16>
      %c0_12 = arith.constant 0 : index
      %c0_13 = arith.constant 0 : index
      %14 = vector.load %arg4[%c0_12, %c0_13] : memref<128x128xbf16, #tpu.memory_space<vmem>>, vector<128x128xbf16>
      %cst_14 = arith.constant dense<0.000000e+00> : vector<128x128xf32>
      %15 = tpu.matmul %13, %14, %cst_14 {dimension_numbers = #tpu.dot_dimension_numbers<[1], [0], [0], [1], [0, 0, 1, 1], [], []>} : vector<128x128xbf16>, vector<128x128xbf16>, vector<128x128xf32> -> vector<128x128xf32>
      %c0_15 = arith.constant 0 : index
      %c0_16 = arith.constant 0 : index
      %16 = vector.load %arg5[%c0_15, %c0_16] : memref<1x128xf32, #tpu.memory_space<vmem>>, vector<1x128xf32>
      %17 = vector.broadcast %16 : vector<1x128xf32> to vector<128x128xf32>
      %18 = arith.addf %15, %17 : vector<128x128xf32>
      %19 = arith.truncf %18 : vector<128x128xf32> to vector<128x128xbf16>
      %c0_17 = arith.constant 0 : index
      %c0_18 = arith.constant 0 : index
      %20 = vector.load %arg6[%c0_17, %c0_18] : memref<128x128xbf16, #tpu.memory_space<vmem>>, vector<128x128xbf16>
      %cst_19 = arith.constant dense<0.000000e+00> : vector<128x128xf32>
      %21 = tpu.matmul %19, %20, %cst_19 {dimension_numbers = #tpu.dot_dimension_numbers<[1], [0], [0], [1], [0, 0, 1, 1], [], []>} : vector<128x128xbf16>, vector<128x128xbf16>, vector<128x128xf32> -> vector<128x128xf32>
      %c0_20 = arith.constant 0 : index
      %c0_21 = arith.constant 0 : index
      %22 = vector.load %arg7[%c0_20, %c0_21] : memref<1x128xf32, #tpu.memory_space<vmem>>, vector<1x128xf32>
      %23 = vector.broadcast %22 : vector<1x128xf32> to vector<128x128xf32>
      %24 = arith.addf %21, %23 : vector<128x128xf32>
      %c0_22 = arith.constant 0 : index
      %c0_23 = arith.constant 0 : index
      %25 = vector.load %arg8[%c0_22, %c0_23] : memref<128x128xf32, #tpu.memory_space<vmem>>, vector<128x128xf32>
      tpu.vector_store %arg8[%c0_22, %c0_23], %24 {strides = array<i32>} : memref<128x128xf32, #tpu.memory_space<vmem>>, vector<128x128xf32>,
    } else {
    }
    return
  }
  func.func @transform_0(%arg0: i32, %arg1: i32) -> (i32, i32) {
    %c0_i32 = arith.constant 0 : i32
    return %arg0, %arg1 : i32, i32
  }
  func.func @transform_1(%arg0: i32, %arg1: i32) -> (i32, i32) {
    %c0_i32 = arith.constant 0 : i32
    %c0_i32_0 = arith.constant 0 : i32
    return %arg1, %c0_i32 : i32, i32
  }
  func.func @transform_2(%arg0: i32, %arg1: i32) -> (i32, i32) {
    %c0_i32 = arith.constant 0 : i32
    %c0_i32_0 = arith.constant 0 : i32
    %c0_i32_1 = arith.constant 0 : i32
    return %c0_i32, %c0_i32_0 : i32, i32
  }
  func.func @transform_3(%arg0: i32, %arg1: i32) -> (i32, i32) {
    %c0_i32 = arith.constant 0 : i32
    %c0_i32_0 = arith.constant 0 : i32
    %c0_i32_1 = arith.constant 0 : i32
    return %c0_i32, %c0_i32_0 : i32, i32
  }
  func.func @transform_4(%arg0: i32, %arg1: i32) -> (i32, i32) {
    %c0_i32 = arith.constant 0 : i32
    %c0_i32_0 = arith.constant 0 : i32
    %c0_i32_1 = arith.constant 0 : i32
    return %c0_i32, %c0_i32_0 : i32, i32
  }
  func.func @transform_5(%arg0: i32, %arg1: i32) -> (i32, i32) {
    %c0_i32 = arith.constant 0 : i32
    %c0_i32_0 = arith.constant 0 : i32
    %c0_i32_1 = arith.constant 0 : i32
    return %c0_i32, %c0_i32_0 : i32, i32
  }
  func.func @transform_6(%arg0: i32, %arg1: i32) -> (i32, i32) {
    %c0_i32 = arith.constant 0 : i32
    %c0_i32_0 = arith.constant 0 : i32
    return %arg0, %c0_i32 : i32, i32
  }
}

</mosaic_0001>

<bundles_post_ra>
// kernel: gcn_forward.5
= control target key start
LH: loop header
LB: loop body
LE: loop exit
PB: predicated region body
PF: predicated region fallthrough
CT: control target
= control target key end

     0   :  { %s928_s1 = inlined_call_operand.vmem [shape: bf16[128,128], index: 1, kind: input, shape index: {}]   ;;  %s929_s0 = inlined_call_operand.vmem [shape: bf16[128,128], index: 0, kind: input, shape index: {}]   ;;  %s930_s2 = inlined_call_operand.vmem [shape: bf16[128,128], index: 2, kind: input, shape index: {}]   ;;  %s931_s3 = inlined_call_operand.vmem [shape: f32[1,128], index: 3, kind: input, shape index: {}]   ;;  %s932_s4 = inlined_call_operand.vmem [shape: bf16[128,128], index: 4, kind: input, shape index: {}]   ;;  %s933_s5 = inlined_call_operand.vmem [shape: f32[1,128], index: 5, kind: input, shape index: {}]   ;;  %s934_s6 = inlined_call_operand.vmem [shape: f32[128,128], index: 6, kind: output, shape index: {}]  }
   0x1   :  { %v700_v0 = vld [vmem:[%s928_s1 + $0x38] sm:$0xff]  ;;  %v699_v1 = vld [vmem:[%s928_s1 + $0x30] sm:$0xff]  ;;  %v698_v2 = vld [vmem:[%s928_s1 + $0x28] sm:$0xff] }
   0x2   :  { %187 = vmatpush.bf16.msra.mxu0 %v700_v0  ;;  %717 = vmatpush.bf16.msra.mxu3 %v700_v0  ;;  %v697_v3 = vld [vmem:[%s928_s1 + $0x20] sm:$0xff]  ;;  %v696_v4 = vld [vmem:[%s928_s1 + $0x18] sm:$0xff]  ;;  %v695_v5 = vld [vmem:[%s928_s1 + $0x10] sm:$0xff] }
   0x3   :  { %v694_v6 = vld [vmem:[%s928_s1 + $0x8] sm:$0xff]  ;;  %v693_v7 = vld [vmem:[%s928_s1] sm:$0xff]  ;;  %v691_v9 = vld [vmem:[%s929_s0 + $0x30] sm:$0xff] }
   0x4   :  { %v685_v8 = vld [vmem:[%s929_s0] sm:$0xff]  ;;  %v686_v10 = vld [vmem:[%s929_s0 + $0x8] sm:$0xff]  ;;  %v692_v11 = vld [vmem:[%s929_s0 + $0x38] sm:$0xff] }
   0x5   :  { %v687_v12 = vld [vmem:[%s929_s0 + $0x10] sm:$0xff]  ;;  %v688_v13 = vld [vmem:[%s929_s0 + $0x18] sm:$0xff]  ;;  %v706_v16 = vld [vmem:[%s930_s2 + $0x28] sm:$0xff] }
   0x6   :  { %188 = vmatpush.bf16.msra.mxu0 %v699_v1  ;;  %718 = vmatpush.bf16.msra.mxu3 %v699_v1  ;;  %v708_v14 = vld [vmem:[%s930_s2 + $0x38] sm:$0xff]  ;;  %v707_v15 = vld [vmem:[%s930_s2 + $0x30] sm:$0xff]  ;;  %v705_v17 = vld [vmem:[%s930_s2 + $0x20] sm:$0xff] }
   0x7   :  { %363 = vmatpush.bf16.msra.mxu1 %v708_v14  ;;  %v689_v18 = vld [vmem:[%s929_s0 + $0x20] sm:$0xff]  ;;  %v704_v19 = vld [vmem:[%s930_s2 + $0x18] sm:$0xff]  ;;  %v690_v20 = vld [vmem:[%s929_s0 + $0x28] sm:$0xff] }
   0x8   :  { %v703_v21 = vld [vmem:[%s930_s2 + $0x10] sm:$0xff]  ;;  %v702_v22 = vld [vmem:[%s930_s2 + $0x8] sm:$0xff]  ;;  %v701_v23 = vld [vmem:[%s930_s2] sm:$0xff] }
   0x9   :  { %v716_v42 = vld [vmem:[%s932_s4 + $0x38] sm:$0xff]  ;;  %v715_v43 = vld [vmem:[%s932_s4 + $0x30] sm:$0xff]  ;;  %v714_v45 = vld [vmem:[%s932_s4 + $0x28] sm:$0xff] }
   0xa   :  { %189 = vmatpush.bf16.msra.mxu0 %v698_v2  ;;  %719 = vmatpush.bf16.msra.mxu3 %v698_v2  ;;  %v713_v46 = vld [vmem:[%s932_s4 + $0x20] sm:$0xff]  ;;  %v712_v49 = vld [vmem:[%s932_s4 + $0x18] sm:$0xff]  ;;  %v711_v53 = vld [vmem:[%s932_s4 + $0x10] sm:$0xff] }
   0xb   :  { %364 = vmatpush.bf16.msra.mxu1 %v707_v15  ;;  %488 = vmatpush.bf16.msra.mxu2 %v716_v42  ;;  %v710_v54 = vld [vmem:[%s932_s4 + $0x8] sm:$0xff]  ;;  %v709_v55 = vld [vmem:[%s932_s4] sm:$0xff] }
   0xc   :  { %v741_v57 = vld [vmem:[%s931_s3] ss:$0 sm:$0xff] }
   0xe   :  { %190 = vmatpush.bf16.msra.mxu0 %v697_v3  ;;  %720 = vmatpush.bf16.msra.mxu3 %v697_v3 }
   0xf   :  { %365 = vmatpush.bf16.msra.mxu1 %v706_v16  ;;  %489 = vmatpush.bf16.msra.mxu2 %v715_v43 }
  0x12   :  { %191 = vmatpush.bf16.msra.mxu0 %v696_v4  ;;  %721 = vmatpush.bf16.msra.mxu3 %v696_v4 }
  0x13   :  { %366 = vmatpush.bf16.msra.mxu1 %v705_v17  ;;  %490 = vmatpush.bf16.msra.mxu2 %v714_v45 }
  0x16   :  { %192 = vmatpush.bf16.msra.mxu0 %v695_v5  ;;  %722 = vmatpush.bf16.msra.mxu3 %v695_v5 }
  0x17   :  { %367 = vmatpush.bf16.msra.mxu1 %v704_v19  ;;  %491 = vmatpush.bf16.msra.mxu2 %v713_v46 }
  0x1a   :  { %193 = vmatpush.bf16.msra.mxu0 %v694_v6  ;;  %723 = vmatpush.bf16.msra.mxu3 %v694_v6 }
  0x1b   :  { %368 = vmatpush.bf16.msra.mxu1 %v703_v21  ;;  %492 = vmatpush.bf16.msra.mxu2 %v712_v49 }
  0x1e   :  { %194 = vmatpush.bf16.msra.mxu0 %v693_v7  ;;  %724 = vmatpush.bf16.msra.mxu3 %v693_v7 }
  0x1f   :  { %369 = vmatpush.bf16.msra.mxu1 %v702_v22  ;;  %493 = vmatpush.bf16.msra.mxu2 %v711_v53 }
  0x21   :  { %195 = vmatmul.bf16.vlgmr.msra.gmra.mxu0 %v685_v8  ;;  %225 = vmatmul.bf16.vlgmr.msra.gmra.mxu3 %v691_v9 }
  0x22   :  { %725 = vmatpush.bf16.msrb.mxu3 %v708_v14 }
  0x23   :  { %370 = vmatpush.bf16.msra.mxu1 %v701_v23  ;;  %494 = vmatpush.bf16.msra.mxu2 %v710_v54 }
  0x26   :  { %726 = vmatpush.bf16.msrb.mxu3 %v707_v15 }
  0x27   :  { %495 = vmatpush.bf16.msra.mxu2 %v709_v55 }
  0x2a   :  { %727 = vmatpush.bf16.msrb.mxu3 %v706_v16 }
  0x2e   :  { %728 = vmatpush.bf16.msrb.mxu3 %v705_v17 }
  0x31   :  { %200 = vmatmul.bf16.gmra.mxu0 %v686_v10  ;;  %230 = vmatmul.bf16.gmra.mxu3 %v692_v11 }
  0x32   :  { %729 = vmatpush.bf16.msrb.mxu3 %v704_v19 }
  0x36   :  { %730 = vmatpush.bf16.msrb.mxu3 %v703_v21 }
  0x3a   :  { %731 = vmatpush.bf16.msrb.mxu3 %v702_v22 }
  0x3e   :  { %732 = vmatpush.bf16.msrb.mxu3 %v701_v23 }
  0x41   :  { %205 = vmatmul.bf16.gmra.mxu0 %v687_v12 }
  0x42   :  { %733 = vmatpush.bf16.msra.mxu3 %v716_v42 }
  0x46   :  { %734 = vmatpush.bf16.msra.mxu3 %v715_v43 }
  0x4a   :  { %735 = vmatpush.bf16.msra.mxu3 %v714_v45 }
  0x4e   :  { %736 = vmatpush.bf16.msra.mxu3 %v713_v46 }
  0x51   :  { %210 = vmatmul.bf16.gmra.mxu0 %v688_v13 }
  0x52   :  { %737 = vmatpush.bf16.msra.mxu3 %v712_v49 }
  0x56   :  { %738 = vmatpush.bf16.msra.mxu3 %v711_v53 }
  0x5a   :  { %739 = vmatpush.bf16.msra.mxu3 %v710_v54 }
  0x5e   :  { %740 = vmatpush.bf16.msra.mxu3 %v709_v55 }
  0x61   :  { %215 = vmatmul.bf16.gmra.mxu0 %v689_v18 }
  0x71   :  { %220 = vmatmul.bf16.gmra.mxu0 %v690_v20 }
  0x9e   :  { %v196_v24 = vpop.f32.mrf.mxu0 }
  0xa4   :  { %v226_v25 = vpop.f32.mrf.mxu3 }
  0xa6   :  { %v198_v26 = vpop.f32.mrf.mxu0 }
  0xa7   :  { %v287_v27 = vpack.c.bf16 %v198_v26, %v196_v24 }
  0xa9   :  { %371 = vmatmul.bf16.vlgmr.msra.gmra.mxu1 %v287_v27 }
  0xac   :  { %v228_v28 = vpop.f32.mrf.mxu3 }
  0xad   :  { %v293_v29 = vpack.c.bf16 %v228_v28, %v226_v25 }
  0xae   :  { %v201_v30 = vpop.f32.mrf.mxu0 }
  0xaf   :  { %401 = vmatmul.bf16.vlgmr.msrb.gmra.mxu3 %v293_v29 }
  0xb4   :  { %v231_v31 = vpop.f32.mrf.mxu3 }
  0xb6   :  { %v203_v32 = vpop.f32.mrf.mxu0 }
  0xb7   :  { %v288_v33 = vpack.c.bf16 %v203_v32, %v201_v30 }
  0xb9   :  { %376 = vmatmul.bf16.gmra.mxu1 %v288_v33  ;;  %v742_v33 = vld [vmem:[%s933_s5] ss:$0 sm:$0xff] }
  0xbc   :  { %v233_v34 = vpop.f32.mrf.mxu3 }
  0xbd   :  { %v294_v35 = vpack.c.bf16 %v233_v34, %v231_v31 }
  0xbe   :  { %v206_v36 = vpop.f32.mrf.mxu0 }
  0xbf   :  { %406 = vmatmul.bf16.gmra.mxu3 %v294_v35 }
  0xc6   :  { %v208_v37 = vpop.f32.mrf.mxu0 }
  0xc7   :  { %v289_v38 = vpack.c.bf16 %v208_v37, %v206_v36 }
  0xc9   :  { %381 = vmatmul.bf16.gmra.mxu1 %v289_v38 }
  0xce   :  { %v211_v39 = vpop.f32.mrf.mxu0 }
  0xd6   :  { %v213_v40 = vpop.f32.mrf.mxu0 }
  0xd7   :  { %v290_v41 = vpack.c.bf16 %v213_v40, %v211_v39 }
  0xd9   :  { %386 = vmatmul.bf16.gmra.mxu1 %v290_v41 }
  0xde   :  { %v216_v44 = vpop.f32.mrf.mxu0 }
  0xe6   :  { %v218_v47 = vpop.f32.mrf.mxu0 }
  0xe7   :  { %v291_v48 = vpack.c.bf16 %v218_v47, %v216_v44 }
  0xe9   :  { %391 = vmatmul.bf16.gmra.mxu1 %v291_v48 }
  0xee   :  { %v221_v50 = vpop.f32.mrf.mxu0 }
  0xf6   :  { %v223_v51 = vpop.f32.mrf.mxu0 }
  0xf7   :  { %v292_v52 = vpack.c.bf16 %v223_v51, %v221_v50 }
  0xf9   :  { %396 = vmatmul.bf16.gmra.mxu1 %v292_v52 }
 0x126   :  { %v372_v56 = vpop.f32.mrf.mxu1 }
 0x127   :  { %v373_v59 = vadd.f32 %v741_v57, %v372_v56 }
 0x12e   :  { %v374_v58 = vpop.f32.mrf.mxu1 }
 0x12f   :  { %v375_v60 = vadd.f32 %v741_v57, %v374_v58 }
 0x131   :  { %v412_v61 = vpack.c.bf16 %v375_v60, %v373_v59 }
 0x132   :  { %v402_v62 = vpop.f32.mrf.mxu3 }
 0x133   :  { %496 = vmatmul.bf16.vlgmr.msra.gmra.mxu2 %v412_v61  ;;  %v403_v0 = vadd.f32 %v741_v57, %v402_v62 }
 0x136   :  { %v377_v63 = vpop.f32.mrf.mxu1 }
 0x137   :  { %v378_v5 = vadd.f32 %v741_v57, %v377_v63 }
 0x13a   :  { %v404_v1 = vpop.f32.mrf.mxu3 }
 0x13b   :  { %v405_v2 = vadd.f32 %v741_v57, %v404_v1 }
 0x13d   :  { %v418_v3 = vpack.c.bf16 %v405_v2, %v403_v0 }
 0x13e   :  { %v379_v4 = vpop.f32.mrf.mxu1 }
 0x13f   :  { %v380_v6 = vadd.f32 %v741_v57, %v379_v4  ;;  %526 = vmatmul.bf16.vlgmr.msra.gmra.mxu3 %v418_v3 }
 0x141   :  { %v413_v7 = vpack.c.bf16 %v380_v6, %v378_v5 }
 0x142   :  { %v407_v8 = vpop.f32.mrf.mxu3 }
 0x143   :  { %501 = vmatmul.bf16.gmra.mxu2 %v413_v7  ;;  %v408_v10 = vadd.f32 %v741_v57, %v407_v8 }
 0x146   :  { %v382_v9 = vpop.f32.mrf.mxu1 }
 0x147   :  { %v383_v15 = vadd.f32 %v741_v57, %v382_v9 }
 0x14a   :  { %v409_v11 = vpop.f32.mrf.mxu3 }
 0x14b   :  { %v410_v12 = vadd.f32 %v741_v57, %v409_v11 }
 0x14d   :  { %v419_v13 = vpack.c.bf16 %v410_v12, %v408_v10 }
 0x14e   :  { %v384_v14 = vpop.f32.mrf.mxu1 }
 0x14f   :  { %v385_v16 = vadd.f32 %v741_v57, %v384_v14  ;;  %531 = vmatmul.bf16.gmra.mxu3 %v419_v13 }
 0x151   :  { %v414_v17 = vpack.c.bf16 %v385_v16, %v383_v15 }
 0x153   :  { %506 = vmatmul.bf16.gmra.mxu2 %v414_v17 }
 0x156   :  { %v387_v18 = vpop.f32.mrf.mxu1 }
 0x157   :  { %v388_v20 = vadd.f32 %v741_v57, %v387_v18 }
 0x15e   :  { %v389_v19 = vpop.f32.mrf.mxu1 }
 0x15f   :  { %v390_v21 = vadd.f32 %v741_v57, %v389_v19 }
 0x161   :  { %v415_v22 = vpack.c.bf16 %v390_v21, %v388_v20 }
 0x163   :  { %511 = vmatmul.bf16.gmra.mxu2 %v415_v22 }
 0x166   :  { %v392_v23 = vpop.f32.mrf.mxu1 }
 0x167   :  { %v393_v25 = vadd.f32 %v741_v57, %v392_v23 }
 0x16e   :  { %v394_v24 = vpop.f32.mrf.mxu1 }
 0x16f   :  { %v395_v26 = vadd.f32 %v741_v57, %v394_v24 }
 0x171   :  { %v416_v27 = vpack.c.bf16 %v395_v26, %v393_v25 }
 0x173   :  { %516 = vmatmul.bf16.gmra.mxu2 %v416_v27 }
 0x176   :  { %v397_v28 = vpop.f32.mrf.mxu1 }
 0x177   :  { %v398_v30 = vadd.f32 %v741_v57, %v397_v28 }
 0x17e   :  { %v399_v29 = vpop.f32.mrf.mxu1 }
 0x17f   :  { %v400_v31 = vadd.f32 %v741_v57, %v399_v29 }
 0x181   :  { %v417_v32 = vpack.c.bf16 %v400_v31, %v398_v30 }
 0x183   :  { %521 = vmatmul.bf16.gmra.mxu2 %v417_v32 }
 0x1b6   :  { %v497_v34 = vpop.f32.mrf.mxu2 }
 0x1b7   :  { %v498_v35 = vadd.f32 %v742_v33, %v497_v34 }
 0x1b9   :  { %537 = vst [vmem:[%s934_s6] sm:$0xff] %v498_v35 }
 0x1be   :  { %v499_v36 = vpop.f32.mrf.mxu2 }
 0x1bf   :  { %v500_v37 = vadd.f32 %v742_v33, %v499_v36 }
 0x1c1   :  { %538 = vst [vmem:[%s934_s6 + $0x8] sm:$0xff] %v500_v37 }
 0x1c2   :  { %v527_v38 = vpop.f32.mrf.mxu3 }
 0x1c3   :  { %v528_v39 = vadd.f32 %v742_v33, %v527_v38 }
 0x1c5   :  { %549 = vst [vmem:[%s934_s6 + $0x60] sm:$0xff] %v528_v39 }
 0x1c6   :  { %v502_v40 = vpop.f32.mrf.mxu2 }
 0x1c7   :  { %v503_v41 = vadd.f32 %v742_v33, %v502_v40 }
 0x1c9   :  { %539 = vst [vmem:[%s934_s6 + $0x10] sm:$0xff] %v503_v41 }
 0x1ca   :  { %v529_v42 = vpop.f32.mrf.mxu3 }
 0x1cb   :  { %v530_v43 = vadd.f32 %v742_v33, %v529_v42 }
 0x1cd   :  { %550 = vst [vmem:[%s934_s6 + $0x68] sm:$0xff] %v530_v43 }
 0x1ce   :  { %v504_v44 = vpop.f32.mrf.mxu2 }
 0x1cf   :  { %v505_v45 = vadd.f32 %v742_v33, %v504_v44 }
 0x1d1   :  { %540 = vst [vmem:[%s934_s6 + $0x18] sm:$0xff] %v505_v45 }
 0x1d2   :  { %v532_v46 = vpop.f32.mrf.mxu3 }
 0x1d3   :  { %v533_v47 = vadd.f32 %v742_v33, %v532_v46 }
 0x1d5   :  { %551 = vst [vmem:[%s934_s6 + $0x70] sm:$0xff] %v533_v47 }
 0x1d6   :  { %v507_v48 = vpop.f32.mrf.mxu2 }
 0x1d7   :  { %v508_v49 = vadd.f32 %v742_v33, %v507_v48 }
 0x1d9   :  { %541 = vst [vmem:[%s934_s6 + $0x20] sm:$0xff] %v508_v49 }
 0x1da   :  { %v534_v50 = vpop.f32.mrf.mxu3 }
 0x1db   :  { %v535_v51 = vadd.f32 %v742_v33, %v534_v50 }
 0x1dd   :  { %552 = vst [vmem:[%s934_s6 + $0x78] sm:$0xff] %v535_v51 }
 0x1de   :  { %v509_v52 = vpop.f32.mrf.mxu2 }
 0x1df   :  { %v510_v53 = vadd.f32 %v742_v33, %v509_v52 }
 0x1e1   :  { %542 = vst [vmem:[%s934_s6 + $0x28] sm:$0xff] %v510_v53 }
 0x1e6   :  { %v512_v54 = vpop.f32.mrf.mxu2 }
 0x1e7   :  { %v513_v55 = vadd.f32 %v742_v33, %v512_v54 }
 0x1e9   :  { %543 = vst [vmem:[%s934_s6 + $0x30] sm:$0xff] %v513_v55 }
 0x1ee   :  { %v514_v56 = vpop.f32.mrf.mxu2 }
 0x1ef   :  { %v515_v57 = vadd.f32 %v742_v33, %v514_v56 }
 0x1f1   :  { %544 = vst [vmem:[%s934_s6 + $0x38] sm:$0xff] %v515_v57 }
 0x1f6   :  { %v517_v58 = vpop.f32.mrf.mxu2 }
 0x1f7   :  { %v518_v59 = vadd.f32 %v742_v33, %v517_v58 }
 0x1f9   :  { %545 = vst [vmem:[%s934_s6 + $0x40] sm:$0xff] %v518_v59 }
 0x1fe   :  { %v519_v60 = vpop.f32.mrf.mxu2 }
 0x1ff   :  { %v520_v61 = vadd.f32 %v742_v33, %v519_v60 }
 0x201   :  { %546 = vst [vmem:[%s934_s6 + $0x48] sm:$0xff] %v520_v61 }
 0x206   :  { %v522_v62 = vpop.f32.mrf.mxu2 }
 0x207   :  { %v523_v63 = vadd.f32 %v742_v33, %v522_v62 }
 0x209   :  { %547 = vst [vmem:[%s934_s6 + $0x50] sm:$0xff] %v523_v63 }
 0x20e   :  { %v524_v0 = vpop.f32.mrf.mxu2 }
 0x20f   :  { %v525_v1 = vadd.f32 %v742_v33, %v524_v0 }
 0x211   :  { %548 = vst [vmem:[%s934_s6 + $0x58] sm:$0xff] %v525_v1 }

// kernel: gcn_forward.3
= control target key start
LH: loop header
LB: loop body
LE: loop exit
PB: predicated region body
PF: predicated region fallthrough
CT: control target
= control target key end

     0   :  { %s766_s1 = inlined_call_operand.vmem [shape: bf16[128,128], index: 1, kind: input, shape index: {}]   ;;  %s767_s0 = inlined_call_operand.vmem [shape: bf16[128,128], index: 0, kind: input, shape index: {}]   ;;  %s768_s2 = inlined_call_operand.vmem [shape: bf16[128,128], index: 2, kind: input, shape index: {}]   ;;  %s769_s3 = inlined_call_operand.vmem [shape: f32[1,128], index: 3, kind: input, shape index: {}]   ;;  %s770_s4 = inlined_call_operand.vmem [shape: bf16[128,128], index: 4, kind: output, shape index: {}]  }
   0x1   :  { %v569_v0 = vld [vmem:[%s766_s1 + $0x38] sm:$0xff]  ;;  %v568_v1 = vld [vmem:[%s766_s1 + $0x30] sm:$0xff]  ;;  %v567_v2 = vld [vmem:[%s766_s1 + $0x28] sm:$0xff] }
   0x2   :  { %181 = vmatpush.bf16.msra.mxu0 %v569_v0  ;;  %625 = vmatpush.bf16.msra.mxu2 %v569_v0  ;;  %v566_v3 = vld [vmem:[%s766_s1 + $0x20] sm:$0xff]  ;;  %v565_v4 = vld [vmem:[%s766_s1 + $0x18] sm:$0xff]  ;;  %v564_v5 = vld [vmem:[%s766_s1 + $0x10] sm:$0xff] }
   0x3   :  { %v563_v6 = vld [vmem:[%s766_s1 + $0x8] sm:$0xff]  ;;  %v562_v7 = vld [vmem:[%s766_s1] sm:$0xff]  ;;  %v577_v12 = vld [vmem:[%s768_s2 + $0x38] sm:$0xff] }
   0x4   :  { %v554_v8 = vld [vmem:[%s767_s0] sm:$0xff]  ;;  %v555_v10 = vld [vmem:[%s767_s0 + $0x8] sm:$0xff]  ;;  %357 = vmatpush.bf16.msra.mxu1 %v577_v12  ;;  %v576_v13 = vld [vmem:[%s768_s2 + $0x30] sm:$0xff]  ;;  %633 = vmatpush.bf16.msra.mxu3 %v577_v12 }
   0x5   :  { %v558_v9 = vld [vmem:[%s767_s0 + $0x20] sm:$0xff]  ;;  %v559_v11 = vld [vmem:[%s767_s0 + $0x28] sm:$0xff]  ;;  %v556_v16 = vld [vmem:[%s767_s0 + $0x10] sm:$0xff] }
   0x6   :  { %182 = vmatpush.bf16.msra.mxu0 %v568_v1  ;;  %626 = vmatpush.bf16.msra.mxu2 %v568_v1  ;;  %v575_v14 = vld [vmem:[%s768_s2 + $0x28] sm:$0xff]  ;;  %v574_v15 = vld [vmem:[%s768_s2 + $0x20] sm:$0xff]  ;;  %v560_v17 = vld [vmem:[%s767_s0 + $0x30] sm:$0xff] }
   0x7   :  { %v573_v18 = vld [vmem:[%s768_s2 + $0x18] sm:$0xff]  ;;  %v572_v21 = vld [vmem:[%s768_s2 + $0x10] sm:$0xff]  ;;  %v571_v22 = vld [vmem:[%s768_s2 + $0x8] sm:$0xff] }
   0x8   :  { %358 = vmatpush.bf16.msra.mxu1 %v576_v13  ;;  %634 = vmatpush.bf16.msra.mxu3 %v576_v13  ;;  %v557_v19 = vld [vmem:[%s767_s0 + $0x18] sm:$0xff]  ;;  %v570_v23 = vld [vmem:[%s768_s2] sm:$0xff] }
   0x9   :  { %v561_v20 = vld [vmem:[%s767_s0 + $0x38] sm:$0xff]  ;;  %v641_v49 = vld [vmem:[%s769_s3] ss:$0 sm:$0xff] }
   0xa   :  { %183 = vmatpush.bf16.msra.mxu0 %v567_v2  ;;  %627 = vmatpush.bf16.msra.mxu2 %v567_v2 }
   0xc   :  { %359 = vmatpush.bf16.msra.mxu1 %v575_v14  ;;  %635 = vmatpush.bf16.msra.mxu3 %v575_v14 }
   0xe   :  { %184 = vmatpush.bf16.msra.mxu0 %v566_v3  ;;  %628 = vmatpush.bf16.msra.mxu2 %v566_v3 }
  0x10   :  { %360 = vmatpush.bf16.msra.mxu1 %v574_v15  ;;  %636 = vmatpush.bf16.msra.mxu3 %v574_v15 }
  0x12   :  { %185 = vmatpush.bf16.msra.mxu0 %v565_v4  ;;  %629 = vmatpush.bf16.msra.mxu2 %v565_v4 }
  0x14   :  { %361 = vmatpush.bf16.msra.mxu1 %v573_v18  ;;  %637 = vmatpush.bf16.msra.mxu3 %v573_v18 }
  0x16   :  { %186 = vmatpush.bf16.msra.mxu0 %v564_v5  ;;  %630 = vmatpush.bf16.msra.mxu2 %v564_v5 }
  0x18   :  { %362 = vmatpush.bf16.msra.mxu1 %v572_v21  ;;  %638 = vmatpush.bf16.msra.mxu3 %v572_v21 }
  0x1a   :  { %187 = vmatpush.bf16.msra.mxu0 %v563_v6  ;;  %631 = vmatpush.bf16.msra.mxu2 %v563_v6 }
  0x1c   :  { %363 = vmatpush.bf16.msra.mxu1 %v571_v22  ;;  %639 = vmatpush.bf16.msra.mxu3 %v571_v22 }
  0x1e   :  { %188 = vmatpush.bf16.msra.mxu0 %v562_v7  ;;  %632 = vmatpush.bf16.msra.mxu2 %v562_v7 }
  0x20   :  { %364 = vmatpush.bf16.msra.mxu1 %v570_v23  ;;  %640 = vmatpush.bf16.msra.mxu3 %v570_v23 }
  0x21   :  { %189 = vmatmul.bf16.vlgmr.msra.gmra.mxu0 %v554_v8  ;;  %209 = vmatmul.bf16.vlgmr.msra.gmra.mxu2 %v558_v9 }
  0x31   :  { %194 = vmatmul.bf16.gmra.mxu0 %v555_v10  ;;  %214 = vmatmul.bf16.gmra.mxu2 %v559_v11 }
  0x41   :  { %199 = vmatmul.bf16.gmra.mxu0 %v556_v16  ;;  %219 = vmatmul.bf16.gmra.mxu2 %v560_v17 }
  0x51   :  { %204 = vmatmul.bf16.gmra.mxu0 %v557_v19  ;;  %224 = vmatmul.bf16.gmra.mxu2 %v561_v20 }
  0x9e   :  { %v190_v24 = vpop.f32.mrf.mxu0 }
  0xa4   :  { %v210_v25 = vpop.f32.mrf.mxu2 }
  0xa6   :  { %v192_v26 = vpop.f32.mrf.mxu0 }
  0xa7   :  { %v281_v27 = vpack.c.bf16 %v192_v26, %v190_v24 }
  0xa9   :  { %365 = vmatmul.bf16.vlgmr.msra.gmra.mxu1 %v281_v27 }
  0xac   :  { %v212_v28 = vpop.f32.mrf.mxu2 }
  0xad   :  { %v285_v29 = vpack.c.bf16 %v212_v28, %v210_v25 }
  0xae   :  { %v195_v30 = vpop.f32.mrf.mxu0 }
  0xaf   :  { %385 = vmatmul.bf16.vlgmr.msra.gmra.mxu3 %v285_v29 }
  0xb4   :  { %v215_v31 = vpop.f32.mrf.mxu2 }
  0xb6   :  { %v197_v32 = vpop.f32.mrf.mxu0 }
  0xb7   :  { %v282_v33 = vpack.c.bf16 %v197_v32, %v195_v30 }
  0xb9   :  { %370 = vmatmul.bf16.gmra.mxu1 %v282_v33 }
  0xbc   :  { %v217_v34 = vpop.f32.mrf.mxu2 }
  0xbd   :  { %v286_v35 = vpack.c.bf16 %v217_v34, %v215_v31 }
  0xbe   :  { %v200_v36 = vpop.f32.mrf.mxu0 }
  0xbf   :  { %390 = vmatmul.bf16.gmra.mxu3 %v286_v35 }
  0xc4   :  { %v220_v37 = vpop.f32.mrf.mxu2 }
  0xc6   :  { %v202_v38 = vpop.f32.mrf.mxu0 }
  0xc7   :  { %v283_v39 = vpack.c.bf16 %v202_v38, %v200_v36 }
  0xc9   :  { %375 = vmatmul.bf16.gmra.mxu1 %v283_v39 }
  0xcc   :  { %v222_v40 = vpop.f32.mrf.mxu2 }
  0xcd   :  { %v287_v41 = vpack.c.bf16 %v222_v40, %v220_v37 }
  0xce   :  { %v205_v42 = vpop.f32.mrf.mxu0 }
  0xcf   :  { %395 = vmatmul.bf16.gmra.mxu3 %v287_v41 }
  0xd4   :  { %v225_v43 = vpop.f32.mrf.mxu2 }
  0xd6   :  { %v207_v44 = vpop.f32.mrf.mxu0 }
  0xd7   :  { %v284_v45 = vpack.c.bf16 %v207_v44, %v205_v42 }
  0xd9   :  { %380 = vmatmul.bf16.gmra.mxu1 %v284_v45 }
  0xdc   :  { %v227_v46 = vpop.f32.mrf.mxu2 }
  0xdd   :  { %v288_v47 = vpack.c.bf16 %v227_v46, %v225_v43 }
  0xdf   :  { %400 = vmatmul.bf16.gmra.mxu3 %v288_v47 }
 0x126   :  { %v366_v48 = vpop.f32.mrf.mxu1 }
 0x127   :  { %v367_v50 = vadd.f32 %v641_v49, %v366_v48 }
 0x129   :  { %v406_v53 = vmax.f32 %v367_v50, 0.0 }
 0x12e   :  { %v368_v51 = vpop.f32.mrf.mxu1 }
 0x12f   :  { %v369_v52 = vadd.f32 %v641_v49, %v368_v51 }
 0x131   :  { %v407_v54 = vmax.f32 %v369_v52, 0.0 }
 0x132   :  { %v386_v55 = vpop.f32.mrf.mxu3 }
 0x133   :  { %v581_v56 = vpack.c.bf16 %v407_v54, %v406_v53  ;;  %v387_v58 = vadd.f32 %v641_v49, %v386_v55 }
 0x135   :  { %582 = vst [vmem:[%s770_s4] sm:$0xff] %v581_v56   ;;  %v414_v61 = vmax.f32 %v387_v58, 0.0 }
 0x136   :  { %v371_v57 = vpop.f32.mrf.mxu1 }
 0x137   :  { %v372_v62 = vadd.f32 %v641_v49, %v371_v57 }
 0x139   :  { %v408_v3 = vmax.f32 %v372_v62, 0.0 }
 0x13a   :  { %v388_v59 = vpop.f32.mrf.mxu3 }
 0x13b   :  { %v389_v60 = vadd.f32 %v641_v49, %v388_v59 }
 0x13d   :  { %v415_v63 = vmax.f32 %v389_v60, 0.0 }
 0x13e   :  { %v373_v0 = vpop.f32.mrf.mxu1 }
 0x13f   :  { %v601_v1 = vpack.c.bf16 %v415_v63, %v414_v61  ;;  %v374_v2 = vadd.f32 %v641_v49, %v373_v0 }
 0x141   :  { %621 = vst [vmem:[%s770_s4 + $0x20] sm:$0xff] %v601_v1   ;;  %v409_v4 = vmax.f32 %v374_v2, 0.0 }
 0x142   :  { %v391_v5 = vpop.f32.mrf.mxu3 }
 0x143   :  { %v586_v6 = vpack.c.bf16 %v409_v4, %v408_v3  ;;  %v392_v8 = vadd.f32 %v641_v49, %v391_v5 }
 0x145   :  { %618 = vst [vmem:[%s770_s4 + $0x8] sm:$0xff] %v586_v6   ;;  %v416_v11 = vmax.f32 %v392_v8, 0.0 }
 0x146   :  { %v376_v7 = vpop.f32.mrf.mxu1 }
 0x147   :  { %v377_v12 = vadd.f32 %v641_v49, %v376_v7 }
 0x149   :  { %v410_v17 = vmax.f32 %v377_v12, 0.0 }
 0x14a   :  { %v393_v9 = vpop.f32.mrf.mxu3 }
 0x14b   :  { %v394_v10 = vadd.f32 %v641_v49, %v393_v9 }
 0x14d   :  { %v417_v13 = vmax.f32 %v394_v10, 0.0 }
 0x14e   :  { %v378_v14 = vpop.f32.mrf.mxu1 }
 0x14f   :  { %v606_v15 = vpack.c.bf16 %v417_v13, %v416_v11  ;;  %v379_v16 = vadd.f32 %v641_v49, %v378_v14 }
 0x151   :  { %622 = vst [vmem:[%s770_s4 + $0x28] sm:$0xff] %v606_v15   ;;  %v411_v18 = vmax.f32 %v379_v16, 0.0 }
 0x152   :  { %v396_v19 = vpop.f32.mrf.mxu3 }
 0x153   :  { %v591_v20 = vpack.c.bf16 %v411_v18, %v410_v17  ;;  %v397_v22 = vadd.f32 %v641_v49, %v396_v19 }
 0x155   :  { %619 = vst [vmem:[%s770_s4 + $0x10] sm:$0xff] %v591_v20   ;;  %v418_v25 = vmax.f32 %v397_v22, 0.0 }
 0x156   :  { %v381_v21 = vpop.f32.mrf.mxu1 }
 0x157   :  { %v382_v26 = vadd.f32 %v641_v49, %v381_v21 }
 0x159   :  { %v412_v31 = vmax.f32 %v382_v26, 0.0 }
 0x15a   :  { %v398_v23 = vpop.f32.mrf.mxu3 }
 0x15b   :  { %v399_v24 = vadd.f32 %v641_v49, %v398_v23 }
 0x15d   :  { %v419_v27 = vmax.f32 %v399_v24, 0.0 }
 0x15e   :  { %v383_v28 = vpop.f32.mrf.mxu1 }
 0x15f   :  { %v611_v29 = vpack.c.bf16 %v419_v27, %v418_v25  ;;  %v384_v30 = vadd.f32 %v641_v49, %v383_v28 }
 0x161   :  { %623 = vst [vmem:[%s770_s4 + $0x30] sm:$0xff] %v611_v29   ;;  %v413_v32 = vmax.f32 %v384_v30, 0.0 }
 0x162   :  { %v401_v33 = vpop.f32.mrf.mxu3 }
 0x163   :  { %v596_v34 = vpack.c.bf16 %v413_v32, %v412_v31  ;;  %v402_v35 = vadd.f32 %v641_v49, %v401_v33 }
 0x165   :  { %620 = vst [vmem:[%s770_s4 + $0x18] sm:$0xff] %v596_v34   ;;  %v420_v38 = vmax.f32 %v402_v35, 0.0 }
 0x16a   :  { %v403_v36 = vpop.f32.mrf.mxu3 }
 0x16b   :  { %v404_v37 = vadd.f32 %v641_v49, %v403_v36 }
 0x16d   :  { %v421_v39 = vmax.f32 %v404_v37, 0.0 }
 0x16f   :  { %v616_v40 = vpack.c.bf16 %v421_v39, %v420_v38 }
 0x171   :  { %624 = vst [vmem:[%s770_s4 + $0x38] sm:$0xff] %v616_v40  }

</bundles_post_ra>
